<compile_context>
chip_gen: v5e
topology: v5e:2x2
jax: 0.10.0
libtpu: 0.0.40
codegen_flags: <defaults>
</compile_context>

<pallas_src>
import jax
import jax.numpy as jnp
from jax.experimental import pallas as pl
from jax.experimental.pallas import tpu as pltpu


def _identity_kernel(x_ref, o_ref):
    # Pure pass-through: forward(x) = inner_model(x); the base Module adds
    # no transformation of its own.
    o_ref[...] = x_ref[...]


# ---- sizing constants ------------------------------------------------------
_SMALL_BYTES = 4 * 1024 * 1024        # single-shot full-array copy threshold
                                      # (1 in + 1 out = 8 MiB, safe on v5e's
                                      # 16 MiB scoped default; v6e/v7x could
                                      # raise this to ~8 MiB).
_TILE_TARGET_BYTES = 2 * 1024 * 1024  # per-block cap: 2 in + 2 out pipeline
                                      # buffers -> 8 MiB, safe on every gen's
                                      # scoped-VMEM default (16/32/32 MiB).
_LANE_CANDIDATES = (8192, 4096, 2048, 1024, 512, 256, 128)


def _itemsize(dtype) -> int:
    return jnp.dtype(dtype).itemsize


def _sublane_min(dtype) -> int:
    # Packed sublane tile: 8 for 4-byte, 16 for 2-byte, 32 for 1-byte dtypes.
    return max(8, 32 // _itemsize(dtype))


def _cost(nbytes: int) -> pl.CostEstimate:
    # Pure identity copy: no flops, just read + write of the whole array.
    return pl.CostEstimate(flops=0, transcendentals=0, bytes_accessed=2 * nbytes)


def _copy_whole_array(x: jax.Array) -> jax.Array:
    """No-grid copy: block == full array dims, one DMA in, one DMA out."""
    nbytes = x.size * _itemsize(x.dtype)
    return pl.pallas_call(
        _identity_kernel,
        out_shape=jax.ShapeDtypeStruct(x.shape, x.dtype),
        input_output_aliases={0: 0},      # output aliases input -> no 2nd HBM alloc
        cost_estimate=_cost(nbytes),
    )(x)


def _copy_tiled_aligned(x: jax.Array) -> jax.Array:
    """Streaming copy for large inputs whose element count is a multiple of 128.

    Lane-dense slab (wide last dim), multi-MiB row tiles, cdiv grid so a
    non-dividing row count just gets a masked last block instead of a
    whole-array fallback.
    """
    n = x.size
    itemsize = _itemsize(x.dtype)
    min_sub = _sublane_min(x.dtype)

    # Widest lane dimension (multiple of 128) that exactly factors the array.
    # Descending order -> lane-dense output (unmasked vst path) preferred.
    lanes = next(l for l in _LANE_CANDIDATES if n % l == 0)  # 128 always divides
    rows = n // lanes

    # Largest dtype-aware multiple-of-min_sub row tile under the byte budget.
    budget_rows = max(_TILE_TARGET_BYTES // (lanes * itemsize), min_sub)
    tile_r = max((budget_rows // min_sub) * min_sub, min_sub)
    tile_r = min(tile_r, ((rows + min_sub - 1) // min_sub) * min_sub)
    tile_bytes = tile_r * lanes * itemsize

    slab = x.reshape(rows, lanes)  # contiguous row-major reshape: metadata only
    out = pl.pallas_call(
        _identity_kernel,
        out_shape=jax.ShapeDtypeStruct((rows, lanes), x.dtype),
        grid=(pl.cdiv(rows, tile_r),),      # last block masked if rows % tile_r != 0
        in_specs=[pl.BlockSpec((tile_r, lanes), lambda i: (i, 0))],
        out_specs=pl.BlockSpec((tile_r, lanes), lambda i: (i, 0)),
        input_output_aliases={0: 0},
        compiler_params=pltpu.CompilerParams(
            # TODO(synk): on v7x, pltpu.CORE_PARALLEL (or an explicit leading
            # core axis) would guarantee the stream splits across both TCs;
            # "parallel" is kept here as the cross-generation-safe choice.
            dimension_semantics=("parallel",),
            # Deterministic VMEM budget: 2 in + 2 out buffers + headroom.
            vmem_limit_bytes=4 * tile_bytes + (4 << 20),
        ),
        cost_estimate=_cost(n * itemsize),
    )(slab)
    return out.reshape(x.shape)


def _pallas_identity_copy(x: jax.Array) -> jax.Array:
    """Materialize the pass-through via a Pallas identity kernel."""
    if x.ndim == 0 or x.size == 0:
        return x  # nothing for a kernel to do
    n = x.size
    nbytes = n * _itemsize(x.dtype)
    if nbytes <= _SMALL_BYTES:
        return _copy_whole_array(x)

    rem = n % 128
    if rem == 0:
        return _copy_tiled_aligned(x)

    # Large ragged size: tiled aligned prefix + tiny single-shot tail.
    # TODO(synk): a single masked-tail pallas_call would avoid the extra
    # slice/concatenate traffic; acceptable here since this path only triggers
    # for >4 MiB arrays whose element count is not a multiple of 128.
    flat = x.reshape(-1)
    head = _copy_tiled_aligned(flat[: n - rem])
    tail = _copy_whole_array(flat[n - rem:])
    return jnp.concatenate([head, tail]).reshape(x.shape)


def module_forward(x: jax.Array, materialize_copy: bool = False) -> jax.Array:
    """Pass-through forward of the PhysicsNeMo base Module (`from_torch` wrapper).

    The base Module applies no transformation, so by default the input is
    returned unchanged (zero HBM traffic — the fastest correct forward).
    Set materialize_copy=True to run the Pallas identity-copy kernel instead
    (bit-exact in shape / dtype / values, output aliased onto the input).
    """
    if not materialize_copy:
        return x
    return _pallas_identity_copy(x)


def module_num_parameters() -> int:
    """Equivalent of Module.num_parameters().

    The base class registers only `device_buffer` (a 0-element *buffer*, not a
    parameter), so the learnable-parameter count is 0.
    """
    params = {}  # base Module owns no parameters
    return int(sum(int(jnp.size(p)) for p in params.values()))


if __name__ == "__main__":
    key = jax.random.PRNGKey(0)
    # Small NCHW input consistent with typical PhysicsNeMo model inputs.
    x = jax.random.normal(key, (2, 4, 16, 16), dtype=jnp.float32)

    # Default (fastest) forward: pure pass-through, no copy at all.
    y_fast = module_forward(x)
    assert y_fast is x

    # Pallas kernel path: identity copy, output aliased onto the input buffer.
    y = module_forward(x, materialize_copy=True)
    y = jax.block_until_ready(y)

    # Forward of the base Module is a pass-through: output must equal input.
    assert y.shape == x.shape and y.dtype == x.dtype
    assert bool(jnp.array_equal(y, x))
    assert module_num_parameters() == 0

    print("KERNEL_OK")
</pallas_src>

<mosaic_0001>
module attributes {stable_mosaic.version = 11 : i64} {
  func.func @_identity_kernel(%arg0: memref<2x4x16x16xf32, #tpu.memory_space<vmem>>, %arg1: memref<2x4x16x16xf32, #tpu.memory_space<vmem>>) attributes {dimension_semantics = [], scalar_prefetch = 0 : i64, scratch_operands = 0 : i64, tpu.core_type = #tpu.core_type<tc>} {
    %c0 = arith.constant 0 : index
    %c0_0 = arith.constant 0 : index
    %c0_1 = arith.constant 0 : index
    %c0_2 = arith.constant 0 : index
    %0 = vector.load %arg0[%c0, %c0_0, %c0_1, %c0_2] : memref<2x4x16x16xf32, #tpu.memory_space<vmem>>, vector<2x4x16x16xf32>
    %c0_3 = arith.constant 0 : index
    %c0_4 = arith.constant 0 : index
    %c0_5 = arith.constant 0 : index
    %c0_6 = arith.constant 0 : index
    %1 = vector.load %arg1[%c0_3, %c0_4, %c0_5, %c0_6] : memref<2x4x16x16xf32, #tpu.memory_space<vmem>>, vector<2x4x16x16xf32>
    tpu.vector_store %arg1[%c0_3, %c0_4, %c0_5, %c0_6], %0 {strides = array<i32>} : memref<2x4x16x16xf32, #tpu.memory_space<vmem>>, vector<2x4x16x16xf32>,
    return
  }
}

</mosaic_0001>

<bundles_post_ra>
// kernel: tpu_custom_call.1
= control target key start
LH: loop header
LB: loop body
LE: loop exit
PB: predicated region body
PF: predicated region fallthrough
CT: control target
= control target key end

     0   :  { %6 = vsyncpa [#allocation3], 0  ;;  %s175_s0 = inlined_call_operand.hbm [shape: f32[2,4,16,16], index: 0, kind: input, shape index: {}, may-alias: {0,1}]   ;;  %s176_s1 = inlined_call_operand.hbm [shape: f32[2,4,16,16], index: 1, kind: output, shape index: {}, may-alias: {0,1}]  }
   0x1   :  { %7 = vsyncpa [#allocation4], 0  ;;  %s12_s8 = sshll.u32 %s175_s0, 4  ;;  %s133_s9 = smov [#allocation2]   ;;  %s13_s8 = int_to_ptr.hbm [resolvable:$true] %s12_s8 }
   0x2   :  { %s14_s10 = sshll.u32 %s133_s9, 4  ;;  %s134_s11 = smov 128   ;;  %s15_s10 = int_to_ptr.vmem [resolvable:$true] %s14_s10 }
   0x3   :  { %s135_s12 = smov 8  }
   0x4   :  { %20 = dma.hbm_to_vmem [thread:$0]  %s13_s8, 2048, %s15_s10, [#allocation3], %s134_s11, %s134_s11, %s135_s12  }
   0x5   :  { %129 = dma.done.wait [#allocation3], 2048  }
   0x6   :  { %130 = vsyncadd [#allocation3], 4294965248  ;;  %vm41_vm0 = vcmask 130048   ;;  %v25_v0 = vld [vmem:[#allocation2] sm:$0xff]  ;;  %v26_v1 = vld [vmem:[#allocation2 + $0x8] sm:$0xff]  ;;  %s136_s0 = smov [#allocation5]  }
   0x7   :  { %v27_v2 = vld [vmem:[#allocation2 + $0x10] sm:$0xff]  ;;  %42 = vst.msk [vmem:[#allocation5] sm:$0xff] %vm41_vm0, %v25_v0  ;;  %v28_v3 = vld [vmem:[#allocation2 + $0x18] sm:$0xff]  ;;  %v29_v4 = vld [vmem:[#allocation2 + $0x20] sm:$0xff]  ;;  %s62_s13 = sshll.u32 %s136_s0, 4  ;;  %s64_s16 = sshll.u32 %s176_s1, 4  ;;  %s63_s13 = int_to_ptr.vmem [resolvable:$true] %s62_s13  ;;  %s65_s16 = int_to_ptr.hbm [resolvable:$true] %s64_s16 }
   0x8   :  { %43 = vst.msk [vmem:[#allocation5 + $0x8] sm:$0xff] %vm41_vm0, %v26_v1  ;;  %v30_v5 = vld [vmem:[#allocation2 + $0x28] sm:$0xff]  ;;  %v31_v6 = vld [vmem:[#allocation2 + $0x30] sm:$0xff]  ;;  %v32_v7 = vld [vmem:[#allocation2 + $0x38] sm:$0xff] }
   0x9   :  { %44 = vst.msk [vmem:[#allocation5 + $0x10] sm:$0xff] %vm41_vm0, %v27_v2  ;;  %v33_v8 = vld [vmem:[#allocation2 + $0x40] sm:$0xff]  ;;  %v34_v9 = vld [vmem:[#allocation2 + $0x48] sm:$0xff]  ;;  %v35_v10 = vld [vmem:[#allocation2 + $0x50] sm:$0xff] }
   0xa   :  { %45 = vst.msk [vmem:[#allocation5 + $0x18] sm:$0xff] %vm41_vm0, %v28_v3  ;;  %v36_v11 = vld [vmem:[#allocation2 + $0x58] sm:$0xff]  ;;  %v37_v12 = vld [vmem:[#allocation2 + $0x60] sm:$0xff]  ;;  %v38_v13 = vld [vmem:[#allocation2 + $0x68] sm:$0xff] }
   0xb   :  { %46 = vst.msk [vmem:[#allocation5 + $0x20] sm:$0xff] %vm41_vm0, %v29_v4  ;;  %v39_v14 = vld [vmem:[#allocation2 + $0x70] sm:$0xff]  ;;  %v40_v15 = vld [vmem:[#allocation2 + $0x78] sm:$0xff] }
   0xc   :  { %47 = vst.msk [vmem:[#allocation5 + $0x28] sm:$0xff] %vm41_vm0, %v30_v5 }
   0xd   :  { %48 = vst.msk [vmem:[#allocation5 + $0x30] sm:$0xff] %vm41_vm0, %v31_v6 }
   0xe   :  { %49 = vst.msk [vmem:[#allocation5 + $0x38] sm:$0xff] %vm41_vm0, %v32_v7 }
   0xf   :  { %50 = vst.msk [vmem:[#allocation5 + $0x40] sm:$0xff] %vm41_vm0, %v33_v8 }
  0x10   :  { %51 = vst.msk [vmem:[#allocation5 + $0x48] sm:$0xff] %vm41_vm0, %v34_v9 }
  0x11   :  { %52 = vst.msk [vmem:[#allocation5 + $0x50] sm:$0xff] %vm41_vm0, %v35_v10 }
  0x12   :  { %53 = vst.msk [vmem:[#allocation5 + $0x58] sm:$0xff] %vm41_vm0, %v36_v11 }
  0x13   :  { %54 = vst.msk [vmem:[#allocation5 + $0x60] sm:$0xff] %vm41_vm0, %v37_v12 }
  0x14   :  { %55 = vst.msk [vmem:[#allocation5 + $0x68] sm:$0xff] %vm41_vm0, %v38_v13 }
  0x15   :  { %56 = vst.msk [vmem:[#allocation5 + $0x70] sm:$0xff] %vm41_vm0, %v39_v14 }
  0x16   :  { %57 = vst.msk [vmem:[#allocation5 + $0x78] sm:$0xff] %vm41_vm0, %v40_v15 }
  0x17   :  { %70 = dma.vmem_to_hbm [thread:$0]  %s63_s13, 2048, %s65_s16, [#allocation4], %s134_s11, %s134_s11, %s135_s12  }
  0x18   :  { %131 = dma.done.wait [#allocation4], 2048  }
  0x19   :  { %132 = vsyncadd [#allocation4], 4294965248 }
  0x1a   :  { %75 = vsyncpa [#allocation3], 1 }
  0x1b   :  { %76 = vsyncpa [#allocation4], 1 }

</bundles_post_ra>
